<compile_context>
chip_gen: v7x
topology: tpu7x:2x2x1
jax: 0.10.0
libtpu: 0.0.40
codegen_flags: <defaults>
</compile_context>

<pallas_src>
from typing import Callable

import jax
import jax.numpy as jnp
from jax.experimental import pallas as pl
from jax.experimental.pallas import tpu as pltpu

_LANES = 128
_SUBLANES = 8
# Up to 4096 rows x 128 lanes per input block (2 MiB f32, 1 MiB bf16).
# (<= 3 inputs) x (2 pipeline buffers) x block + f32 temporaries stays well
# under the explicit 32 MiB scoped-VMEM budget on v5e/v6e/v7x.
_MAX_TILE_ROWS = 4096
# Velocity path: rows processed per grid step across the batched items.
_TARGET_STEP_ROWS = 4096
_VMEM_LIMIT_BYTES = 32 * 1024 * 1024


def _round_up(x: int, m: int) -> int:
    return ((x + m - 1) // m) * m


def _cdiv(a: int, b: int) -> int:
    return (a + b - 1) // b


def _sublane_mult(dtype) -> int:
    # dtype-aware sublane packing: f32 -> 8, bf16 -> 16, int8/fp8 -> 32.
    return max(_SUBLANES, 32 // max(1, jnp.dtype(dtype).itemsize))


def _mse_two_pallas(pred: jnp.ndarray, target: jnp.ndarray, *,
                    max_tile_rows: int = _MAX_TILE_ROWS) -> jnp.ndarray:
    """mean((pred - target)**2) over all elements. Inputs keep native dtype."""
    n = int(pred.size)
    sub = max(_sublane_mult(pred.dtype), _sublane_mult(target.dtype))
    align = sub * _LANES
    n_pad = _round_up(n, align)          # minimal pad (< sub*128 elements)
    rows = n_pad // _LANES
    tile_r = min(max_tile_rows, rows)    # multiple of 8 by construction
    n_blocks = _cdiv(rows, tile_r)
    mask_rows = (rows % tile_r) != 0
    inv_n = float(1.0 / n)

    def to_rows(x):
        flat = x.reshape(-1)
        if n_pad != n:
            flat = jnp.pad(flat, (0, n_pad - n))
        return flat.reshape(rows, _LANES)

    p = to_rows(pred)
    t = to_rows(target)

    def kernel(p_ref, t_ref, out_ref):
        d = p_ref[...].astype(jnp.float32) - t_ref[...].astype(jnp.float32)
        if mask_rows:
            k = pl.program_id(0)
            row = jax.lax.broadcasted_iota(jnp.int32, (tile_r, 1), 0) + k * tile_r
            d = jnp.where(row < rows, d, 0.0)
        total = jnp.sum(d * d)
        out_ref[...] = jnp.broadcast_to(total, (_SUBLANES, _LANES))

    bytes_accessed = (int(p.size) * p.dtype.itemsize
                      + int(t.size) * t.dtype.itemsize
                      + n_blocks * _SUBLANES * _LANES * 4)
    partials = pl.pallas_call(
        kernel,
        out_shape=jax.ShapeDtypeStruct((n_blocks, _SUBLANES, _LANES), jnp.float32),
        grid=(n_blocks,),
        in_specs=[
            pl.BlockSpec((tile_r, _LANES), lambda k: (k, 0)),  # prediction
            pl.BlockSpec((tile_r, _LANES), lambda k: (k, 0)),  # target
        ],
        out_specs=pl.BlockSpec((None, _SUBLANES, _LANES), lambda k: (k, 0, 0)),
        compiler_params=pltpu.CompilerParams(
            dimension_semantics=("parallel",),
            vmem_limit_bytes=_VMEM_LIMIT_BYTES),
        cost_estimate=pl.CostEstimate(
            flops=3 * n, transcendentals=0, bytes_accessed=int(bytes_accessed)),
    )(p, t)
    # Each block's partial sum is replicated across its (8,128) output tile;
    # read one scalar per block and reduce with XLA (tiny array).
    return jnp.sum(partials[:, 0, 0]) * inv_n


def _mse_velocity_pallas(pred: jnp.ndarray,
                         samp: jnp.ndarray,
                         noise: jnp.ndarray,
                         a: jnp.ndarray,
                         b: jnp.ndarray, *,
                         max_tile_rows: int = _MAX_TILE_ROWS,
                         target_step_rows: int = _TARGET_STEP_ROWS) -> jnp.ndarray:
    """mean((pred - (a[b]*samp + b[b]*noise))**2) with per-batch a, b."""
    B = int(pred.shape[0])
    D = int(pred.size) // B
    sub = max(_sublane_mult(pred.dtype), _sublane_mult(samp.dtype),
              _sublane_mult(noise.dtype))
    align = sub * _LANES
    d_pad = _round_up(D, align)          # minimal per-batch pad only if needed
    rows = d_pad // _LANES
    tile_r = min(max_tile_rows, rows)
    bt = max(1, min(B, target_step_rows // tile_r))   # batch items per step
    n_rb = _cdiv(rows, tile_r)
    n_bt = _cdiv(B, bt)
    mask_rows = (rows % tile_r) != 0
    mask_batch = (B % bt) != 0
    inv_n = float(1.0 / (B * D))

    def to_rows(x):
        x2 = x.reshape(B, -1)
        if d_pad != D:
            x2 = jnp.pad(x2, ((0, 0), (0, d_pad - D)))
        return x2.reshape(B, rows, _LANES)

    p = to_rows(pred)
    s = to_rows(samp)
    nz = to_rows(noise)
    a3 = a.reshape(B, 1, 1).astype(jnp.float32)
    b3 = b.reshape(B, 1, 1).astype(jnp.float32)

    def kernel(a_ref, b_ref, p_ref, s_ref, n_ref, out_ref):
        tgt = (a_ref[...] * s_ref[...].astype(jnp.float32)
               + b_ref[...] * n_ref[...].astype(jnp.float32))
        d = p_ref[...].astype(jnp.float32) - tgt
        if mask_batch or mask_rows:
            valid = None
            if mask_batch:
                bi = pl.program_id(0)
                bidx = jax.lax.broadcasted_iota(jnp.int32, (bt, 1, 1), 0) + bi * bt
                valid = bidx < B
            if mask_rows:
                k = pl.program_id(1)
                ridx = jax.lax.broadcasted_iota(jnp.int32, (1, tile_r, 1), 1) + k * tile_r
                rvalid = ridx < rows
                valid = rvalid if valid is None else (valid & rvalid)
            d = jnp.where(valid, d, 0.0)
        total = jnp.sum(d * d)
        out_ref[...] = jnp.broadcast_to(total, (_SUBLANES, _LANES))

    def data_spec():
        return pl.BlockSpec((bt, tile_r, _LANES), lambda bi, k: (bi, k, 0))

    def coef_spec():
        return pl.BlockSpec((bt, 1, 1), lambda bi, k: (bi, 0, 0))

    n_out = n_bt * n_rb
    bytes_accessed = (int(p.size) * p.dtype.itemsize
                      + int(s.size) * s.dtype.itemsize
                      + int(nz.size) * nz.dtype.itemsize
                      + 2 * B * 4 + n_out * _SUBLANES * _LANES * 4)
    partials = pl.pallas_call(
        kernel,
        out_shape=jax.ShapeDtypeStruct((n_out, _SUBLANES, _LANES), jnp.float32),
        grid=(n_bt, n_rb),
        in_specs=[
            coef_spec(),   # a  (B,1,1) f32
            coef_spec(),   # b  (B,1,1) f32
            data_spec(),   # prediction
            data_spec(),   # sample
            data_spec(),   # noise
        ],
        out_specs=pl.BlockSpec((None, _SUBLANES, _LANES),
                               lambda bi, k: (bi * n_rb + k, 0, 0)),
        compiler_params=pltpu.CompilerParams(
            dimension_semantics=("parallel", "parallel"),
            vmem_limit_bytes=_VMEM_LIMIT_BYTES),
        cost_estimate=pl.CostEstimate(
            flops=7 * B * D, transcendentals=0, bytes_accessed=int(bytes_accessed)),
    )(a3, b3, p, s, nz)
    return jnp.sum(partials[:, 0, 0]) * inv_n


class DiffusionCriterion:
    """JAX/Pallas port of the PyTorch DiffusionCriterion base class
    (with the canonical MSE-against-target concretization)."""

    def __init__(self,
                 sigma_data: float,
                 scale_fn: Callable,
                 scale_deriv_fn: Callable,
                 sigma_fn: Callable,
                 sigma_deriv_fn: Callable,
                 prediction_type: str) -> None:
        self.sigma_data = sigma_data
        self.scale_fn = scale_fn
        self.scale_deriv_fn = scale_deriv_fn
        self.sigma_fn = sigma_fn
        self.sigma_deriv_fn = sigma_deriv_fn
        self.prediction_type = prediction_type
        assert self.prediction_type in ["sample", "epsilon", "velocity"], \
            f"Unknown prediction type: {self.prediction_type}"
        # TODO(synk): the base class carries no loss weighting (e.g. EDM
        # sigma_data-based weights); plain MSE against the target is used here.

    def __call__(self, prediction, sample, noise, timestep):
        fn = getattr(self, f"forward_{self.prediction_type}")
        return fn(prediction, sample, noise, timestep)

    def forward_sample(self, prediction, sample, noise, timestep):
        # Specialized two-input kernel: noise is never read.
        return _mse_two_pallas(prediction, sample)

    def forward_epsilon(self, prediction, sample, noise, timestep):
        # Specialized two-input kernel: sample is never read.
        return _mse_two_pallas(prediction, noise)

    def forward_velocity(self, prediction, sample, noise, timestep):
        B = prediction.shape[0]
        t = timestep.astype(jnp.float32)
        a = jnp.broadcast_to(jnp.asarray(self.scale_deriv_fn(t), jnp.float32), (B,))
        b = jnp.broadcast_to(jnp.asarray(self.sigma_deriv_fn(t), jnp.float32), (B,))
        return _mse_velocity_pallas(prediction, sample, noise, a, b)


if __name__ == "__main__":
    # Rectified-flow style schedule: x_t = (1 - t) * x0 + t * eps
    scale_fn = lambda t: 1.0 - t
    scale_deriv_fn = lambda t: -jnp.ones_like(t)
    sigma_fn = lambda t: t
    sigma_deriv_fn = lambda t: jnp.ones_like(t)

    B, C, H, W = 2, 4, 16, 16  # small NCHW shapes, D = C*H*W = 1024
    key = jax.random.PRNGKey(0)
    k1, k2, k3, k4 = jax.random.split(key, 4)
    prediction = jax.random.normal(k1, (B, C, H, W), jnp.float32)
    sample = jax.random.normal(k2, (B, C, H, W), jnp.float32)
    noise = jax.random.normal(k3, (B, C, H, W), jnp.float32)
    timestep = jax.random.uniform(k4, (B,), jnp.float32)

    ok = True

    def reference(pred, samp, nz, ts, ptype):
        if ptype == "sample":
            tgt = samp.astype(jnp.float32)
        elif ptype == "epsilon":
            tgt = nz.astype(jnp.float32)
        else:
            av = scale_deriv_fn(ts)[:, None, None, None]
            bv = sigma_deriv_fn(ts)[:, None, None, None]
            tgt = av * samp.astype(jnp.float32) + bv * nz.astype(jnp.float32)
        return jnp.mean((pred.astype(jnp.float32) - tgt) ** 2)

    # f32 inputs
    for ptype in ("sample", "epsilon", "velocity"):
        crit = DiffusionCriterion(
            sigma_data=1.0,
            scale_fn=scale_fn, scale_deriv_fn=scale_deriv_fn,
            sigma_fn=sigma_fn, sigma_deriv_fn=sigma_deriv_fn,
            prediction_type=ptype)
        loss = jax.block_until_ready(crit(prediction, sample, noise, timestep))
        ref = reference(prediction, sample, noise, timestep, ptype)
        ok &= bool(jnp.allclose(loss, ref, rtol=1e-5, atol=1e-5))

    # bf16 inputs stream in native dtype (no wrapper upcast); upcast happens
    # on load inside the kernel.
    pred_bf = prediction.astype(jnp.bfloat16)
    samp_bf = sample.astype(jnp.bfloat16)
    noise_bf = noise.astype(jnp.bfloat16)
    for ptype in ("epsilon", "velocity"):
        crit = DiffusionCriterion(
            sigma_data=1.0,
            scale_fn=scale_fn, scale_deriv_fn=scale_deriv_fn,
            sigma_fn=sigma_fn, sigma_deriv_fn=sigma_deriv_fn,
            prediction_type=ptype)
        loss = jax.block_until_ready(crit(pred_bf, samp_bf, noise_bf, timestep))
        ref = reference(pred_bf, samp_bf, noise_bf, timestep, ptype)
        ok &= bool(jnp.allclose(loss, ref, rtol=1e-3, atol=1e-3))

    # Extra checks exercising the partial-block masking paths with
    # artificially small tiles (so the masked specializations get compiled
    # and validated even at small test shapes).
    predm = jax.random.normal(k1, (3, 4, 16, 16), jnp.float32)   # rows = 24
    sampm = jax.random.normal(k2, (3, 4, 16, 16), jnp.float32)
    noisem = jax.random.normal(k3, (3, 4, 16, 16), jnp.float32)
    tsm = jax.random.uniform(k4, (3,), jnp.float32)

    loss = jax.block_until_ready(_mse_two_pallas(predm, sampm, max_tile_rows=16))
    ref = reference(predm, sampm, noisem, tsm, "sample")
    ok &= bool(jnp.allclose(loss, ref, rtol=1e-5, atol=1e-5))

    am = jnp.broadcast_to(jnp.asarray(scale_deriv_fn(tsm), jnp.float32), (3,))
    bm = jnp.broadcast_to(jnp.asarray(sigma_deriv_fn(tsm), jnp.float32), (3,))
    loss = jax.block_until_ready(
        _mse_velocity_pallas(predm, sampm, noisem, am, bm,
                             max_tile_rows=8, target_step_rows=16))
    ref = reference(predm, sampm, noisem, tsm, "velocity")
    ok &= bool(jnp.allclose(loss, ref, rtol=1e-5, atol=1e-5))

    if not ok:
        raise RuntimeError("Pallas DiffusionCriterion mismatch vs JAX reference")
    print("KERNEL_OK")
</pallas_src>

<mosaic_0001>
module attributes {stable_mosaic.version = 11 : i64} {
  func.func @kernel(%arg0: i32, %arg1: memref<16x128xf32, #tpu.memory_space<vmem>>, %arg2: memref<16x128xf32, #tpu.memory_space<vmem>>, %arg3: memref<1x8x128xf32, #tpu.memory_space<vmem>>) attributes {dimension_semantics = [#tpu.dimension_semantics<parallel>], iteration_bounds = array<i64: 1>, scalar_prefetch = 0 : i64, scratch_operands = 0 : i64, tpu.core_type = #tpu.core_type<tc>, window_params = [{transform_indices = @transform_0, window_bounds = array<i64: 16, 128>}, {transform_indices = @transform_1, window_bounds = array<i64: 16, 128>}, {transform_indices = @transform_2, window_bounds = array<i64: 1, 8, 128>}]} {
    %c0 = arith.constant 0 : index
    %c0_0 = arith.constant 0 : index
    %0 = vector.load %arg1[%c0, %c0_0] : memref<16x128xf32, #tpu.memory_space<vmem>>, vector<16x128xf32>
    %c0_1 = arith.constant 0 : index
    %c0_2 = arith.constant 0 : index
    %1 = vector.load %arg2[%c0_1, %c0_2] : memref<16x128xf32, #tpu.memory_space<vmem>>, vector<16x128xf32>
    %2 = arith.subf %0, %1 : vector<16x128xf32>
    %3 = arith.mulf %2, %2 : vector<16x128xf32>
    %4 = vector.shape_cast %3 : vector<16x128xf32> to vector<1x16x128xf32>
    %cst = arith.constant dense<0.000000e+00> : vector<1xf32>
    %5 = vector.multi_reduction <add>, %4, %cst [1, 2] : vector<1x16x128xf32> to vector<1xf32>
    %6 = vector.shape_cast %5 : vector<1xf32> to vector<1x1x1xf32>
    %7 = vector.extract %6[0, 0, 0] : f32 from vector<1x1x1xf32>
    %8 = vector.broadcast %7 : f32 to vector<8x128xf32>
    %c0_3 = arith.constant 0 : index
    %c0_4 = arith.constant 0 : index
    %c0_5 = arith.constant 0 : index
    %9 = vector.load %arg3[%c0_3, %c0_4, %c0_5] : memref<1x8x128xf32, #tpu.memory_space<vmem>>, vector<1x8x128xf32>
    %10 = vector.shape_cast %9 : vector<1x8x128xf32> to vector<8x128xf32>
    %11 = vector.shape_cast %8 : vector<8x128xf32> to vector<1x8x128xf32>
    tpu.vector_store %arg3[%c0_3, %c0_4, %c0_5], %11 {strides = array<i32>} : memref<1x8x128xf32, #tpu.memory_space<vmem>>, vector<1x8x128xf32>,
    return
  }
  func.func @transform_0(%arg0: i32) -> (i32, i32) {
    %c0_i32 = arith.constant 0 : i32
    %c0_i32_0 = arith.constant 0 : i32
    return %arg0, %c0_i32 : i32, i32
  }
  func.func @transform_1(%arg0: i32) -> (i32, i32) {
    %c0_i32 = arith.constant 0 : i32
    %c0_i32_0 = arith.constant 0 : i32
    return %arg0, %c0_i32 : i32, i32
  }
  func.func @transform_2(%arg0: i32) -> (i32, i32, i32) {
    %c0_i32 = arith.constant 0 : i32
    %c0_i32_0 = arith.constant 0 : i32
    %c0_i32_1 = arith.constant 0 : i32
    return %arg0, %c0_i32, %c0_i32_0 : i32, i32, i32
  }
}

</mosaic_0001>

<bundles_post_ra>
// kernel: tpu_custom_call.1
= control target key start
LH: loop header
LB: loop body
LE: loop exit
PB: predicated region body
PF: predicated region fallthrough
CT: control target
= control target key end

     0   :  { %7 = vsyncpa [#allocation3], 0  ;;  %s211_s0 = inlined_call_operand.hbm [shape: f32[16,128], index: 0, kind: input, shape index: {}]   ;;  %s212_s1 = inlined_call_operand.hbm [shape: f32[16,128], index: 1, kind: input, shape index: {}]   ;;  %s213_s2 = inlined_call_operand.hbm [shape: f32[1,8,128], index: 2, kind: output, shape index: {}]  }
   0x1   :  { %8 = vsyncpa [#allocation6], 0 }
   0x2   :  { %9 = vsyncpa [#allocation4], 0  ;;  %s155_s9 = smov [#allocation2]   ;;  %s83_s13 = scalar_lea.hbm %s211_s0, 256 }
   0x3   :  { %s15_s10 = sshll.u32 %s155_s9, 4  ;;  %p84_p0 = scmp.ne.s32.totalorder %s211_s0, %s83_s13  ;;  %s16_s10 = int_to_ptr.vmem [resolvable:$true] %s15_s10 }
   0x4   :  { %p87_p1 = scmp.lt.u32.totalorder %s83_s13, %s211_s0 }
   0x6   :  { %p89_p2 = pnand %p87_p1, %p84_p0 }
   0x8   :  { %92 = shalt.err (!%p89_p2)
}
   0x9   :  { %s93_s18 = scalar_lea.vmem %s16_s10, 256  ;;  %p98_p4 = scmp.lt.s32.totalorder %s16_s10, %s16_s10 }
   0xa   :  { %p94_p3 = scmp.ne.s32.totalorder %s16_s10, %s93_s18  ;;  %p99_p5 = scmp.lt.s32.totalorder %s93_s18, %s93_s18 }
   0xc   :  { %p100_p6 = por %p99_p5, %p98_p4 }
   0xe   :  { %p101_p7 = pnand %p100_p6, %p94_p3 }
  0x10   :  { %104 = shalt.err (!%p101_p7)
}
  0x11   :  { %s156_s19 = smov 128   ;;  %s157_s20 = smov 8  }
  0x12   :  { %21 = dma.hbm_to_vmem [thread:$0]  %s211_s0, 256, %s16_s10, [#allocation3], %s156_s19, %s156_s19, %s157_s20  }
  0x13   :  { %s158_s23 = smov [#allocation5]   ;;  %s105_s27 = scalar_lea.hbm %s212_s1, 256 }
  0x14   :  { %s27_s24 = sshll.u32 %s158_s23, 4  ;;  %p106_p8 = scmp.ne.s32.totalorder %s212_s1, %s105_s27  ;;  %s28_s24 = int_to_ptr.vmem [resolvable:$true] %s27_s24 }
  0x15   :  { %p109_p9 = scmp.lt.u32.totalorder %s105_s27, %s212_s1 }
  0x17   :  { %p111_p10 = pnand %p109_p9, %p106_p8 }
  0x19   :  { %114 = shalt.err (!%p111_p10)
}
  0x1a   :  { %s115_s4 = scalar_lea.vmem %s28_s24, 256  ;;  %p120_p12 = scmp.lt.s32.totalorder %s28_s24, %s28_s24 }
  0x1b   :  { %p116_p11 = scmp.ne.s32.totalorder %s28_s24, %s115_s4  ;;  %p121_p13 = scmp.lt.s32.totalorder %s115_s4, %s115_s4 }
  0x1d   :  { %p122_p0 = por %p121_p13, %p120_p12 }
  0x1f   :  { %p123_p1 = pnand %p122_p0, %p116_p11 }
  0x21   :  { %126 = shalt.err (!%p123_p1)
}
  0x22   :  { %33 = dma.hbm_to_vmem [thread:$0]  %s212_s1, 256, %s28_s24, [#allocation6], %s156_s19, %s156_s19, %s157_s20  }
  0x23   :  { %149 = dma.done.wait [#allocation3], 256  }
  0x24   :  { %150 = vsyncadd [#allocation3], 4294967040 }
  0x25   :  { %151 = dma.done.wait [#allocation6], 256  }
  0x26   :  { %152 = vsyncadd [#allocation6], 4294967040  ;;  %v40_v0 = vld [vmem:[#allocation2] sm:$0xff]  ;;  %v41_v1 = vld [vmem:[#allocation2 + $0x8] sm:$0xff]  ;;  %s159_s1 = smov [#allocation7]  }
  0x27   :  { %v42_v2 = vld [vmem:[#allocation5] sm:$0xff]  ;;  %v43_v3 = vld [vmem:[#allocation5 + $0x8] sm:$0xff]  ;;  %s66_s6 = sshll.u32 %s159_s1, 4  ;;  %s67_s6 = int_to_ptr.vmem [resolvable:$true] %s66_s6 }
  0x28   :  { %v44_v4 = vsub.f32 %v40_v0, %v42_v2  ;;  %v45_v5 = vsub.f32 %v41_v1, %v43_v3  ;;  %s127_s8 = scalar_lea.vmem %s67_s6, 128  ;;  %p132_p3 = scmp.lt.s32.totalorder %s67_s6, %s67_s6 }
  0x29   :  { %p128_p2 = scmp.ne.s32.totalorder %s67_s6, %s127_s8  ;;  %p133_p4 = scmp.lt.s32.totalorder %s127_s8, %s127_s8 }
  0x2a   :  { %v46_v6 = vmul.f32 %v44_v4, %v44_v4  ;;  %v47_v7 = vmul.f32 %v45_v5, %v45_v5 }
  0x2b   :  { %p134_p5 = por %p133_p4, %p132_p3 }
  0x2c   :  { %v48_v8 = vadd.f32 %v47_v7, %v46_v6 }
  0x2d   :  { %p135_p6 = pnand %p134_p5, %p128_p2 }
  0x2e   :  { %49 = vadd.xlane.f32.xlu0 %v48_v8 }
  0xbb   :  { %v50_v9 = vpop.xlane.xlu0 %49 }
  0xbc   :  { %v51_v10 = vrot.slane %v50_v9, 4 }
  0xbe   :  { %v52_v11 = vadd.f32 %v51_v10, %v50_v9 }
  0xc0   :  { %v53_v12 = vrot.slane %v52_v11, 2 }
  0xc2   :  { %v54_v13 = vadd.f32 %v53_v12, %v52_v11 }
  0xc4   :  { %v55_v14 = vrot.slane %v54_v13, 1 }
  0xc6   :  { %v56_v15 = vadd.f32 %v55_v14, %v54_v13 }
  0xc8   :  { %76 = vpush %v56_v15 }
  0xf9   :  { %s77_s7 = spop %76 }
  0xfa   :  { %v58_v16 = vstv %s77_s7 }
  0xfb   :  { %59 = vst [vmem:[#allocation7] sm:$0xff] %v58_v16 }
  0xfc   :  { %138 = shalt.err (!%p135_p6)
}
  0xfd   :  { %s139_s11 = scalar_lea.hbm %s213_s2, 128 }
  0xfe   :  { %p140_p7 = scmp.ne.s32.totalorder %s213_s2, %s139_s11  ;;  %p143_p8 = scmp.lt.u32.totalorder %s139_s11, %s213_s2 }
 0x100   :  { %p145_p9 = pnand %p143_p8, %p140_p7 }
 0x102   :  { %148 = shalt.err (!%p145_p9)
}
 0x103   :  { %69 = dma.vmem_to_hbm [thread:$0]  %s67_s6, 128, %s213_s2, [#allocation4]  }
 0x104   :  { %153 = dma.done.wait [#allocation4], 128  }
 0x105   :  { %154 = vsyncadd [#allocation4], 4294967168 }
 0x106   :  { %73 = vsyncpa [#allocation3], 1 }
 0x107   :  { %74 = vsyncpa [#allocation6], 1 }
 0x108   :  { %75 = vsyncpa [#allocation4], 1 }

</bundles_post_ra>
